<compile_context>
chip_gen: v6e
topology: v6e:2x2x1
jax: 0.10.0
libtpu: 0.0.40
codegen_flags: <defaults>
</compile_context>

<pallas_src>
import functools

import jax
import jax.numpy as jnp
from jax.experimental import pallas as pl
from jax.experimental.pallas import tpu as pltpu

_MiB = 1024 * 1024


def _round_up(x, m):
    return (x + m - 1) // m * m


def _vmem_tile_bytes(shape, dtype):
    """VMEM occupancy of a 2-D buffer including (sublane, 128-lane) padding."""
    r, c = shape
    it = jnp.dtype(dtype).itemsize
    sublane = 8 * max(1, 4 // it)            # f32: 8, bf16: 16, int8/fp8: 32
    return _round_up(max(r, 1), sublane) * _round_up(max(c, 1), 128) * it


def _vmem_capacity_bytes():
    """Per-core VMEM capacity; conservative 64 MiB (v7x) if the query fails."""
    try:
        cap = getattr(pltpu.get_tpu_info(), "vmem_capacity_bytes", None)
        if cap:
            return int(cap)
    except Exception:
        pass
    return 64 * _MiB


def _default_block_b(B):
    if B < 8:
        return B                              # single full-array block
    if B < 256:
        return (B // 8) * 8                   # sublane aligned; tail block masked
    # Large batch: >= 2 tiles so v7x megacore can split the "parallel" axis,
    # 128-row granularity (full 256-row MXU passes when they fit), cap at 512.
    tiles = max(2, pl.cdiv(B, 512))
    return min(512, _round_up(pl.cdiv(B, tiles), 128))


# --------------------------- kernels ---------------------------------------


def _mlp_kernel_resident(x_ref, w1_ref, b1_ref, w2_ref, b2_ref, o_ref):
    # fc1: (TB, S) @ (S, Hp) + (1, Hp) -> ReLU   (f32 MXU accumulation)
    h = jnp.dot(x_ref[...], w1_ref[...], preferred_element_type=jnp.float32)
    h = jnp.maximum(h + b1_ref[...], 0.0)
    # fc2: (TB, Hp) @ (Hp, Ap) + (1, Ap)
    y = jnp.dot(h.astype(w2_ref.dtype), w2_ref[...],
                preferred_element_type=jnp.float32)
    o_ref[...] = (y + b2_ref[...]).astype(o_ref.dtype)


def _mlp_kernel_hstream(x_ref, w1_ref, b1_ref, w2_ref, b2_ref, o_ref, acc_ref):
    # Streams H in slabs; fc2 partial sums accumulate in an f32 VMEM scratch.
    k = pl.program_id(1)

    @pl.when(k == 0)
    def _():
        acc_ref[...] = jnp.zeros_like(acc_ref)

    h = jnp.dot(x_ref[...], w1_ref[...], preferred_element_type=jnp.float32)
    h = jnp.maximum(h + b1_ref[...], 0.0)          # ReLU is per-hidden-unit: exact
    acc_ref[...] += jnp.dot(h.astype(w2_ref.dtype), w2_ref[...],
                            preferred_element_type=jnp.float32)

    @pl.when(k == pl.num_programs(1) - 1)
    def _():
        o_ref[...] = (acc_ref[...] + b2_ref[...]).astype(o_ref.dtype)


# --------------------------- wrapper ----------------------------------------


def prepare_params(w1, b1, w2, b2, *, use_bf16=False):
    """One-time weight prep (pad H/A to 128-lane multiples, optional bf16 cast).

    Hoisted out of the per-call forward so weights are not re-padded / re-cast
    (a full HBM read+write of all weights) on every call.
    Padded bias entries are zero, so padded columns stay zero through ReLU/fc2.
    """
    S, H = w1.shape
    A = w2.shape[1]
    H_pad = _round_up(H, 128)
    A_pad = _round_up(A, 128)
    b1 = jnp.asarray(b1).reshape(1, H)
    b2 = jnp.asarray(b2).reshape(1, A)
    w1p = jnp.pad(w1, ((0, 0), (0, H_pad - H)))
    b1p = jnp.pad(b1, ((0, 0), (0, H_pad - H))).astype(jnp.float32)
    w2p = jnp.pad(w2, ((0, H_pad - H), (0, A_pad - A)))
    b2p = jnp.pad(b2, ((0, 0), (0, A_pad - A))).astype(jnp.float32)
    if use_bf16:
        # bf16 MXU inputs + f32 accumulation: a win on v5e/v6e/v7x alike.
        w1p = w1p.astype(jnp.bfloat16)
        w2p = w2p.astype(jnp.bfloat16)
    return w1p, b1p, w2p, b2p


@functools.partial(
    jax.jit,
    static_argnames=("action_num", "block_b", "h_block", "weight_buffers"))
def mlp_forward(x, w1p, b1p, w2p, b2p, *, action_num=None, block_b=None,
                h_block=None, weight_buffers=1):
    """x: (B, S), prepared params from prepare_params() -> (B, action_num)."""
    B, S = x.shape
    H_pad = w1p.shape[1]
    A_pad = w2p.shape[1]
    out_dtype = x.dtype
    if action_num is None:
        action_num = A_pad

    w_dtype = w1p.dtype
    xc = x.astype(w_dtype)        # cheap activation cast; weights are pre-cast

    # ---- batch tiling (no pad/slice: Pallas masks the partial last block) ----
    if block_b is None:
        block_b = _default_block_b(B)
    else:                          # sanitize user value against the (8,128) rule
        block_b = int(block_b)
        block_b = B if (block_b >= B or B < 8) else max(8, (block_b // 8) * 8)
    n_b = pl.cdiv(B, block_b)

    capacity = _vmem_capacity_bytes()
    wb = int(weight_buffers)

    def const_spec(shape):
        # Constant-index (resident) operand: a single pipeline buffer suffices.
        if wb == 1:
            return pl.BlockSpec(shape, lambda *_: (0, 0),
                                pipeline_mode=pl.Buffered(1))
        return pl.BlockSpec(shape, lambda *_: (0, 0))

    # ---- honest VMEM accounting (buffer counts + sublane/lane padding) ----
    io_bytes = (2 * _vmem_tile_bytes((block_b, S), w_dtype)       # x (dbl buf)
                + 2 * _vmem_tile_bytes((block_b, A_pad), out_dtype))  # out
    resident_w_bytes = wb * (_vmem_tile_bytes((S, H_pad), w_dtype)
                             + _vmem_tile_bytes((1, H_pad), jnp.float32)
                             + _vmem_tile_bytes((H_pad, A_pad), w_dtype)
                             + _vmem_tile_bytes((1, A_pad), jnp.float32))

    # ---- decide whether to stream H slabs instead of keeping weights resident
    if h_block is None and io_bytes + resident_w_bytes > 0.6 * capacity:
        acc_bytes = _vmem_tile_bytes((block_b, A_pad), jnp.float32)
        fixed = io_bytes + acc_bytes + wb * _vmem_tile_bytes((1, A_pad),
                                                             jnp.float32)
        per_128 = 2 * (_vmem_tile_bytes((S, 128), w_dtype)
                       + _vmem_tile_bytes((1, 128), jnp.float32)
                       + _vmem_tile_bytes((128, A_pad), w_dtype))
        budget = max(0.0, 0.6 * capacity - fixed)
        m = H_pad // 128
        j = max(1, min(int(budget // per_128), m))
        while m % j:               # h_block must divide H_pad exactly
            j -= 1
        h_block = 128 * j

    if h_block is not None and int(h_block) < H_pad:
        h_block = int(h_block)
        if h_block % 128 or H_pad % h_block:
            raise ValueError(
                f"h_block={h_block} must be a multiple of 128 dividing the "
                f"padded hidden dim {H_pad}")
        n_h = H_pad // h_block
        grid = (n_b, n_h)
        in_specs = [
            pl.BlockSpec((block_b, S), lambda i, k: (i, 0)),       # x tile
            pl.BlockSpec((S, h_block), lambda i, k: (0, k)),       # w1 slab
            pl.BlockSpec((1, h_block), lambda i, k: (0, k)),       # b1 slab
            pl.BlockSpec((h_block, A_pad), lambda i, k: (k, 0)),   # w2 slab
            const_spec((1, A_pad)),                                # b2 resident
        ]
        out_spec = pl.BlockSpec((block_b, A_pad), lambda i, k: (i, 0))
        scratch = [pltpu.VMEM((block_b, A_pad), jnp.float32)]
        kernel = _mlp_kernel_hstream
        dim_sem = ("parallel", "arbitrary")
        vmem_needed = (io_bytes
                       + _vmem_tile_bytes((block_b, A_pad), jnp.float32)
                       + 2 * (_vmem_tile_bytes((S, h_block), w_dtype)
                              + _vmem_tile_bytes((1, h_block), jnp.float32)
                              + _vmem_tile_bytes((h_block, A_pad), w_dtype))
                       + wb * _vmem_tile_bytes((1, A_pad), jnp.float32))
    else:
        grid = (n_b,)
        in_specs = [
            pl.BlockSpec((block_b, S), lambda i: (i, 0)),          # x tile
            const_spec((S, H_pad)),                                # w1 resident
            const_spec((1, H_pad)),                                # b1 resident
            const_spec((H_pad, A_pad)),                            # w2 resident
            const_spec((1, A_pad)),                                # b2 resident
        ]
        out_spec = pl.BlockSpec((block_b, A_pad), lambda i: (i, 0))
        scratch = []
        kernel = _mlp_kernel_resident
        dim_sem = ("parallel",)
        vmem_needed = io_bytes + resident_w_bytes

    # ---- scheduler hints ----
    flops = 2 * B * (S * H_pad + H_pad * A_pad)
    bytes_accessed = (jnp.dtype(w_dtype).itemsize
                      * (B * S + S * H_pad + H_pad * A_pad)
                      + 4 * (H_pad + A_pad)
                      + jnp.dtype(out_dtype).itemsize * B * A_pad)
    cost = pl.CostEstimate(flops=int(flops), transcendentals=0,
                           bytes_accessed=int(bytes_accessed))

    # Generation-aware limit: ~54 MiB on v7x (64 MiB VMEM), ~108 MiB on v5e/v6e.
    vmem_limit = int(min(max(1.25 * vmem_needed, 32 * _MiB), 0.85 * capacity))

    out = pl.pallas_call(
        kernel,
        out_shape=jax.ShapeDtypeStruct((B, A_pad), out_dtype),
        grid_spec=pltpu.PrefetchScalarGridSpec(
            num_scalar_prefetch=0,
            grid=grid,
            in_specs=in_specs,
            out_specs=out_spec,
            scratch_shapes=scratch,
        ),
        compiler_params=pltpu.CompilerParams(
            dimension_semantics=dim_sem,
            vmem_limit_bytes=vmem_limit,
        ),
        cost_estimate=cost,
    )(xc, w1p, b1p, w2p, b2p)

    # Only the padded action columns are sliced off (no batch-row copy).
    return out[:, :action_num] if action_num != A_pad else out


def init_params(key, state_dim, action_num, hidden_dim):
    """Deterministic init mimicking nn.Linear's U(-1/sqrt(fan_in), 1/sqrt(fan_in))."""
    k1, k2, k3, k4 = jax.random.split(key, 4)
    bound1 = 1.0 / (state_dim ** 0.5)
    bound2 = 1.0 / (hidden_dim ** 0.5)
    # Stored as (in_features, out_features) == W.T relative to PyTorch.
    w1 = jax.random.uniform(k1, (state_dim, hidden_dim), jnp.float32, -bound1, bound1)
    b1 = jax.random.uniform(k2, (1, hidden_dim), jnp.float32, -bound1, bound1)
    w2 = jax.random.uniform(k3, (hidden_dim, action_num), jnp.float32, -bound2, bound2)
    b2 = jax.random.uniform(k4, (1, action_num), jnp.float32, -bound2, bound2)
    return w1, b1, w2, b2


if __name__ == "__main__":
    batch, state_dim, hidden_dim, action_num = 8, 16, 32, 6

    key = jax.random.PRNGKey(0)
    kx, kp = jax.random.split(key)
    x = jax.random.normal(kx, (batch, state_dim), jnp.float32)
    w1, b1, w2, b2 = init_params(kp, state_dim, action_num, hidden_dim)

    # Pure-JAX reference of the forward semantics.
    ref = jnp.maximum(x @ w1 + b1, 0.0) @ w2 + b2

    # One-time parameter prep (padding / casting hoisted out of the forward).
    p32 = prepare_params(w1, b1, w2, b2)

    # f32 path, resident weights with single-buffered specs; fall back to
    # default double buffering if this jax build rejects Buffered(1).
    wbuf = 1
    try:
        out = jax.block_until_ready(
            mlp_forward(x, *p32, action_num=action_num, weight_buffers=wbuf))
    except Exception:
        wbuf = 2
        out = jax.block_until_ready(
            mlp_forward(x, *p32, action_num=action_num, weight_buffers=wbuf))
    assert out.shape == (batch, action_num)
    assert jnp.allclose(out, ref, atol=1e-5, rtol=1e-5)

    # bf16 MXU-input path (f32 accumulation + f32 epilogue): lever on v5e/v6e/v7x.
    pbf = prepare_params(w1, b1, w2, b2, use_bf16=True)
    out_bf = jax.block_until_ready(
        mlp_forward(x, *pbf, action_num=action_num, weight_buffers=wbuf))
    assert out_bf.shape == (batch, action_num)
    assert jnp.allclose(out_bf, ref, atol=2e-2, rtol=2e-2)

    # Exercise the hidden-dim-streaming (accumulator) path that large hidden
    # dims fall back to, forced here with small shapes (H_pad=256, 2 slabs).
    hidden_dim2 = 256
    w1b, b1b, w2b, b2b = init_params(jax.random.PRNGKey(1), state_dim,
                                     action_num, hidden_dim2)
    ref2 = jnp.maximum(x @ w1b + b1b, 0.0) @ w2b + b2b
    p2 = prepare_params(w1b, b1b, w2b, b2b)
    out2 = jax.block_until_ready(
        mlp_forward(x, *p2, action_num=action_num, h_block=128,
                    weight_buffers=wbuf))
    assert out2.shape == (batch, action_num)
    assert jnp.allclose(out2, ref2, atol=1e-4, rtol=1e-4)

    print("KERNEL_OK")
</pallas_src>

<mosaic_0001>
module attributes {stable_mosaic.version = 11 : i64} {
  func.func @_mlp_kernel_resident(%arg0: i32, %arg1: memref<8x16xf32, #tpu.memory_space<vmem>>, %arg2: memref<16x128xf32, #tpu.memory_space<vmem>>, %arg3: memref<1x128xf32, #tpu.memory_space<vmem>>, %arg4: memref<128x128xf32, #tpu.memory_space<vmem>>, %arg5: memref<1x128xf32, #tpu.memory_space<vmem>>, %arg6: memref<8x128xf32, #tpu.memory_space<vmem>>) attributes {dimension_semantics = [#tpu.dimension_semantics<parallel>], iteration_bounds = array<i64: 1>, scalar_prefetch = 0 : i64, scratch_operands = 0 : i64, tpu.core_type = #tpu.core_type<tc>, window_params = [{transform_indices = @transform_0, window_bounds = array<i64: 8, 16>}, {pipeline_mode = #tpu.pipeline_mode<synchronous>, transform_indices = @transform_1, window_bounds = array<i64: 16, 128>}, {pipeline_mode = #tpu.pipeline_mode<synchronous>, transform_indices = @transform_2, window_bounds = array<i64: 1, 128>}, {pipeline_mode = #tpu.pipeline_mode<synchronous>, transform_indices = @transform_3, window_bounds = array<i64: 128, 128>}, {pipeline_mode = #tpu.pipeline_mode<synchronous>, transform_indices = @transform_4, window_bounds = array<i64: 1, 128>}, {transform_indices = @transform_5, window_bounds = array<i64: 8, 128>}]} {
    %c0 = arith.constant 0 : index
    %c0_0 = arith.constant 0 : index
    %0 = vector.load %arg1[%c0, %c0_0] : memref<8x16xf32, #tpu.memory_space<vmem>>, vector<8x16xf32>
    %c0_1 = arith.constant 0 : index
    %c0_2 = arith.constant 0 : index
    %1 = vector.load %arg2[%c0_1, %c0_2] : memref<16x128xf32, #tpu.memory_space<vmem>>, vector<16x128xf32>
    %cst = arith.constant dense<0.000000e+00> : vector<8x128xf32>
    %2 = tpu.matmul %0, %1, %cst {dimension_numbers = #tpu.dot_dimension_numbers<[1], [0], [0], [1], [0, 0, 1, 1], [], []>} : vector<8x16xf32>, vector<16x128xf32>, vector<8x128xf32> -> vector<8x128xf32>
    %c0_3 = arith.constant 0 : index
    %c0_4 = arith.constant 0 : index
    %3 = vector.load %arg3[%c0_3, %c0_4] : memref<1x128xf32, #tpu.memory_space<vmem>>, vector<1x128xf32>
    %4 = vector.broadcast %3 : vector<1x128xf32> to vector<8x128xf32>
    %5 = arith.addf %2, %4 : vector<8x128xf32>
    %cst_5 = arith.constant 0.000000e+00 : f32
    %6 = vector.broadcast %cst_5 : f32 to vector<8x128xf32>
    %7 = arith.maximumf %5, %6 : vector<8x128xf32>
    %c0_6 = arith.constant 0 : index
    %c0_7 = arith.constant 0 : index
    %8 = vector.load %arg4[%c0_6, %c0_7] : memref<128x128xf32, #tpu.memory_space<vmem>>, vector<128x128xf32>
    %cst_8 = arith.constant dense<0.000000e+00> : vector<8x128xf32>
    %9 = tpu.matmul %7, %8, %cst_8 {dimension_numbers = #tpu.dot_dimension_numbers<[1], [0], [0], [1], [0, 0, 1, 1], [], []>} : vector<8x128xf32>, vector<128x128xf32>, vector<8x128xf32> -> vector<8x128xf32>
    %c0_9 = arith.constant 0 : index
    %c0_10 = arith.constant 0 : index
    %10 = vector.load %arg5[%c0_9, %c0_10] : memref<1x128xf32, #tpu.memory_space<vmem>>, vector<1x128xf32>
    %11 = vector.broadcast %10 : vector<1x128xf32> to vector<8x128xf32>
    %12 = arith.addf %9, %11 : vector<8x128xf32>
    %c0_11 = arith.constant 0 : index
    %c0_12 = arith.constant 0 : index
    %13 = vector.load %arg6[%c0_11, %c0_12] : memref<8x128xf32, #tpu.memory_space<vmem>>, vector<8x128xf32>
    tpu.vector_store %arg6[%c0_11, %c0_12], %12 {strides = array<i32>} : memref<8x128xf32, #tpu.memory_space<vmem>>, vector<8x128xf32>,
    return
  }
  func.func @transform_0(%arg0: i32) -> (i32, i32) {
    %c0_i32 = arith.constant 0 : i32
    %c0_i32_0 = arith.constant 0 : i32
    return %arg0, %c0_i32 : i32, i32
  }
  func.func @transform_1(%arg0: i32) -> (i32, i32) {
    %c0_i32 = arith.constant 0 : i32
    %c0_i32_0 = arith.constant 0 : i32
    %c0_i32_1 = arith.constant 0 : i32
    return %c0_i32, %c0_i32_0 : i32, i32
  }
  func.func @transform_2(%arg0: i32) -> (i32, i32) {
    %c0_i32 = arith.constant 0 : i32
    %c0_i32_0 = arith.constant 0 : i32
    %c0_i32_1 = arith.constant 0 : i32
    return %c0_i32, %c0_i32_0 : i32, i32
  }
  func.func @transform_3(%arg0: i32) -> (i32, i32) {
    %c0_i32 = arith.constant 0 : i32
    %c0_i32_0 = arith.constant 0 : i32
    %c0_i32_1 = arith.constant 0 : i32
    return %c0_i32, %c0_i32_0 : i32, i32
  }
  func.func @transform_4(%arg0: i32) -> (i32, i32) {
    %c0_i32 = arith.constant 0 : i32
    %c0_i32_0 = arith.constant 0 : i32
    %c0_i32_1 = arith.constant 0 : i32
    return %c0_i32, %c0_i32_0 : i32, i32
  }
  func.func @transform_5(%arg0: i32) -> (i32, i32) {
    %c0_i32 = arith.constant 0 : i32
    %c0_i32_0 = arith.constant 0 : i32
    return %arg0, %c0_i32 : i32, i32
  }
}

module attributes {stable_mosaic.version = 11 : i64} {
  func.func @_mlp_kernel_resident(%arg0: i32, %arg1: memref<8x16xf32, #tpu.memory_space<vmem>>, %arg2: memref<16x128xf32, #tpu.memory_space<vmem>>, %arg3: memref<1x128xf32, #tpu.memory_space<vmem>>, %arg4: memref<128x128xf32, #tpu.memory_space<vmem>>, %arg5: memref<1x128xf32, #tpu.memory_space<vmem>>, %arg6: memref<8x128xf32, #tpu.memory_space<vmem>>) attributes {dimension_semantics = [#tpu.dimension_semantics<parallel>], iteration_bounds = array<i64: 1>, scalar_prefetch = 0 : i64, scratch_operands = 0 : i64, tpu.core_type = #tpu.core_type<tc>, window_params = [{transform_indices = @transform_0, window_bounds = array<i64: 8, 16>}, {pipeline_mode = #tpu.pipeline_mode<synchronous>, transform_indices = @transform_1, window_bounds = array<i64: 16, 128>}, {pipeline_mode = #tpu.pipeline_mode<synchronous>, transform_indices = @transform_2, window_bounds = array<i64: 1, 128>}, {pipeline_mode = #tpu.pipeline_mode<synchronous>, transform_indices = @transform_3, window_bounds = array<i64: 128, 128>}, {pipeline_mode = #tpu.pipeline_mode<synchronous>, transform_indices = @transform_4, window_bounds = array<i64: 1, 128>}, {transform_indices = @transform_5, window_bounds = array<i64: 8, 128>}]} {
    %c0 = arith.constant 0 : index
    %c0_0 = arith.constant 0 : index
    %0 = vector.load %arg1[%c0, %c0_0] : memref<8x16xf32, #tpu.memory_space<vmem>>, vector<8x16xf32>
    %c0_1 = arith.constant 0 : index
    %c0_2 = arith.constant 0 : index
    %1 = vector.load %arg2[%c0_1, %c0_2] : memref<16x128xf32, #tpu.memory_space<vmem>>, vector<16x128xf32>
    %cst = arith.constant dense<0.000000e+00> : vector<8x128xf32>
    %2 = tpu.matmul %0, %1, %cst {dimension_numbers = #tpu.dot_dimension_numbers<[1], [0], [0], [1], [0, 0, 1, 1], [], []>} : vector<8x16xf32>, vector<16x128xf32>, vector<8x128xf32> -> vector<8x128xf32>
    %c0_3 = arith.constant 0 : index
    %c0_4 = arith.constant 0 : index
    %3 = vector.load %arg3[%c0_3, %c0_4] : memref<1x128xf32, #tpu.memory_space<vmem>>, vector<1x128xf32>
    %4 = vector.broadcast %3 : vector<1x128xf32> to vector<8x128xf32>
    %5 = arith.addf %2, %4 : vector<8x128xf32>
    %cst_5 = arith.constant 0.000000e+00 : f32
    %6 = vector.broadcast %cst_5 : f32 to vector<8x128xf32>
    %7 = arith.maximumf %5, %6 : vector<8x128xf32>
    %c0_6 = arith.constant 0 : index
    %c0_7 = arith.constant 0 : index
    %8 = vector.load %arg4[%c0_6, %c0_7] : memref<128x128xf32, #tpu.memory_space<vmem>>, vector<128x128xf32>
    %cst_8 = arith.constant dense<0.000000e+00> : vector<8x128xf32>
    %9 = tpu.matmul %7, %8, %cst_8 {dimension_numbers = #tpu.dot_dimension_numbers<[1], [0], [0], [1], [0, 0, 1, 1], [], []>} : vector<8x128xf32>, vector<128x128xf32>, vector<8x128xf32> -> vector<8x128xf32>
    %c0_9 = arith.constant 0 : index
    %c0_10 = arith.constant 0 : index
    %10 = vector.load %arg5[%c0_9, %c0_10] : memref<1x128xf32, #tpu.memory_space<vmem>>, vector<1x128xf32>
    %11 = vector.broadcast %10 : vector<1x128xf32> to vector<8x128xf32>
    %12 = arith.addf %9, %11 : vector<8x128xf32>
    %c0_11 = arith.constant 0 : index
    %c0_12 = arith.constant 0 : index
    %13 = vector.load %arg6[%c0_11, %c0_12] : memref<8x128xf32, #tpu.memory_space<vmem>>, vector<8x128xf32>
    tpu.vector_store %arg6[%c0_11, %c0_12], %12 {strides = array<i32>} : memref<8x128xf32, #tpu.memory_space<vmem>>, vector<8x128xf32>,
    return
  }
  func.func @transform_0(%arg0: i32) -> (i32, i32) {
    %c0_i32 = arith.constant 0 : i32
    %c0_i32_0 = arith.constant 0 : i32
    return %arg0, %c0_i32 : i32, i32
  }
  func.func @transform_1(%arg0: i32) -> (i32, i32) {
    %c0_i32 = arith.constant 0 : i32
    %c0_i32_0 = arith.constant 0 : i32
    %c0_i32_1 = arith.constant 0 : i32
    return %c0_i32, %c0_i32_0 : i32, i32
  }
  func.func @transform_2(%arg0: i32) -> (i32, i32) {
    %c0_i32 = arith.constant 0 : i32
    %c0_i32_0 = arith.constant 0 : i32
    %c0_i32_1 = arith.constant 0 : i32
    return %c0_i32, %c0_i32_0 : i32, i32
  }
  func.func @transform_3(%arg0: i32) -> (i32, i32) {
    %c0_i32 = arith.constant 0 : i32
    %c0_i32_0 = arith.constant 0 : i32
    %c0_i32_1 = arith.constant 0 : i32
    return %c0_i32, %c0_i32_0 : i32, i32
  }
  func.func @transform_4(%arg0: i32) -> (i32, i32) {
    %c0_i32 = arith.constant 0 : i32
    %c0_i32_0 = arith.constant 0 : i32
    %c0_i32_1 = arith.constant 0 : i32
    return %c0_i32, %c0_i32_0 : i32, i32
  }
  func.func @transform_5(%arg0: i32) -> (i32, i32) {
    %c0_i32 = arith.constant 0 : i32
    %c0_i32_0 = arith.constant 0 : i32
    return %arg0, %c0_i32 : i32, i32
  }
}

</mosaic_0001>

<bundles_post_ra>
// kernel: mlp_forward.1
= control target key start
LH: loop header
LB: loop body
LE: loop exit
PB: predicated region body
PF: predicated region fallthrough
CT: control target
= control target key end

     0   :  { %10 = vsyncpa [#allocation3], 0  ;;  %s470_s0 = inlined_call_operand.hbm [shape: f32[8,16], index: 0, kind: input, shape index: {}]   ;;  %s471_s1 = inlined_call_operand.hbm [shape: f32[16,128], index: 1, kind: input, shape index: {}]   ;;  %s472_s2 = inlined_call_operand.vmem [shape: f32[1,128], index: 2, kind: input, shape index: {}]   ;;  %s473_s3 = inlined_call_operand.hbm [shape: f32[128,128], index: 3, kind: input, shape index: {}]   ;;  %s474_s4 = inlined_call_operand.vmem [shape: f32[1,128], index: 4, kind: input, shape index: {}]   ;;  %s475_s5 = inlined_call_operand.hbm [shape: f32[8,128], index: 5, kind: output, shape index: {}]  }
   0x1   :  { %11 = vsyncpa [#allocation6], 0 }
   0x2   :  { %12 = vsyncpa [#allocation4], 0  ;;  %s414_s18 = smov [#allocation5]  }
   0x3   :  { %s28_s19 = sshll.u32 %s414_s18, 4  ;;  %s29_s19 = int_to_ptr.vmem [resolvable:$true] %s28_s19 }
   0x4   :  { %s336_s20 = scalar_lea.vmem %s29_s19, 256  ;;  %p341_p1 = scmp.lt.s32.totalorder %s29_s19, %s29_s19 }
   0x5   :  { %p337_p0 = scmp.ne.s32.totalorder %s29_s19, %s336_s20  ;;  %p342_p2 = scmp.lt.s32.totalorder %s336_s20, %s336_s20 }
   0x7   :  { %p343_p3 = por %p342_p2, %p341_p1 }
   0x9   :  { %p344_p4 = pnand %p343_p3, %p337_p0 }
   0xb   :  { %347 = shalt.err (!%p344_p4)
}
   0xc   :  { %s415_s21 = smov 128   ;;  %s416_s22 = smov 8  }
   0xd   :  { %34 = dma.hbm_to_vmem [thread:$0]  %s471_s1, 256, %s29_s19, [#allocation6], %s415_s21, %s415_s21, %s416_s22  }
   0xe   :  { %s417_s25 = smov [#allocation2]   ;;  %s418_s27 = smov [#allocation7]  }
   0xf   :  { %s19_s26 = sshll.u32 %s417_s25, 4  ;;  %s42_s28 = sshll.u32 %s418_s27, 4  ;;  %s20_s26 = int_to_ptr.vmem [resolvable:$true] %s19_s26  ;;  %s43_s28 = int_to_ptr.vmem [resolvable:$true] %s42_s28 }
  0x10   :  { %s356_s29 = scalar_lea.vmem %s20_s26, 128  ;;  %p361_p6 = scmp.lt.s32.totalorder %s20_s26, %s20_s26 }
  0x11   :  { %p357_p5 = scmp.ne.s32.totalorder %s20_s26, %s356_s29  ;;  %p362_p7 = scmp.lt.s32.totalorder %s356_s29, %s356_s29 }
  0x13   :  { %p363_p8 = por %p362_p7, %p361_p6 }
  0x15   :  { %p364_p9 = pnand %p363_p8, %p357_p5 }
  0x17   :  { %367 = shalt.err (!%p364_p9)
}
  0x18   :  { %22 = dma.hbm_to_vmem [thread:$0]  %s470_s0, 128, %s20_s26, [#allocation3]  }
  0x19   :  { %s376_s7 = scalar_lea.vmem %s43_s28, 2048  ;;  %p381_p11 = scmp.lt.s32.totalorder %s43_s28, %s43_s28 }
  0x1a   :  { %p377_p10 = scmp.ne.s32.totalorder %s43_s28, %s376_s7  ;;  %p382_p12 = scmp.lt.s32.totalorder %s376_s7, %s376_s7 }
  0x1c   :  { %p383_p13 = por %p382_p12, %p381_p11 }
  0x1e   :  { %p384_p0 = pnand %p383_p13, %p377_p10 }
  0x20   :  { %387 = shalt.err (!%p384_p0)
}
  0x21   :  { %48 = dma.hbm_to_vmem [thread:$0]  %s473_s3, 2048, %s43_s28, [#allocation6], %s415_s21, %s415_s21, %s416_s22  }
  0x22   :  { %408 = dma.done.wait [#allocation3], 128  }
  0x23   :  { %409 = vsyncadd [#allocation3], 4294967168 }
  0x24   :  { %410 = dma.done.wait [#allocation6], 2304  }
  0x25   :  { %411 = vsyncadd [#allocation6], 4294964992  ;;  %v419_v0 = vmov 0.0   ;;  %vm420_vm0 = vmmov 0   ;;  %v62_v1 = vld [vmem:[#allocation5 + $0x8] sm:$0xff]  ;;  %v61_v2 = vld [vmem:[#allocation5] sm:$0xff] }
  0x26   :  { %278 = vmatprep.subr.mxu0 %v419_v0  ;;  %282 = vmatprep.mubr.msk.f32.mxu0 %vm420_vm0, %v419_v0  ;;  %v60_v3 = vld [vmem:[#allocation2] sm:$0xff]  ;;  %vm70_vm1 = vcmask 130048   ;;  %v160_v4 = vld [vmem:[#allocation7 + $0x78] sm:$0xff]  ;;  %v159_v5 = vld [vmem:[#allocation7 + $0x70] sm:$0xff]  ;;  %s421_s11 = smov [#allocation8]  }
  0x27   :  { %285 = vmatprep.subr.mxu1 %v419_v0  ;;  %317 = vmatprep.mubr.msk.f32.mxu1 %vm420_vm0, %v419_v0  ;;  %v158_v6 = vld [vmem:[#allocation7 + $0x68] sm:$0xff]  ;;  %v157_v7 = vld [vmem:[#allocation7 + $0x60] sm:$0xff]  ;;  %v156_v8 = vld [vmem:[#allocation7 + $0x58] sm:$0xff]  ;;  %s245_s12 = sshll.u32 %s421_s11, 4  ;;  %s246_s12 = int_to_ptr.vmem [resolvable:$true] %s245_s12 }
  0x28   :  { %279 = vmatpush3.msra.mxu0 %v62_v1  ;;  %286 = vmatpush3.msra.mxu1 %v160_v4  ;;  %v155_v9 = vld [vmem:[#allocation7 + $0x50] sm:$0xff]  ;;  %v154_v10 = vld [vmem:[#allocation7 + $0x48] sm:$0xff]  ;;  %v153_v11 = vld [vmem:[#allocation7 + $0x40] sm:$0xff]  ;;  %s388_s13 = scalar_lea.vmem %s246_s12, 128  ;;  %p393_p2 = scmp.lt.s32.totalorder %s246_s12, %s246_s12 }
  0x29   :  { %280 = vmatprep.subr.mxu0 %v419_v0  ;;  %287 = vmatprep.subr.mxu1 %v419_v0  ;;  %v152_v12 = vld [vmem:[#allocation7 + $0x38] sm:$0xff]  ;;  %v151_v13 = vld [vmem:[#allocation7 + $0x30] sm:$0xff]  ;;  %v150_v14 = vld [vmem:[#allocation7 + $0x28] sm:$0xff]  ;;  %p389_p1 = scmp.ne.s32.totalorder %s246_s12, %s388_s13  ;;  %p394_p3 = scmp.lt.s32.totalorder %s388_s13, %s388_s13 }
  0x2a   :  { %281 = vmatpush3.msra.mxu0 %v61_v2  ;;  %288 = vmatpush3.msra.mxu1 %v159_v5  ;;  %v149_v15 = vld [vmem:[#allocation7 + $0x20] sm:$0xff]  ;;  %v148_v16 = vld [vmem:[#allocation7 + $0x18] sm:$0xff]  ;;  %v147_v17 = vld [vmem:[#allocation7 + $0x10] sm:$0xff] }
  0x2b   :  { %283 = vmatmul.mubr.msk.f32.vlgmr.msra.gmra.mxu0 %vm70_vm1, %v60_v3  ;;  %289 = vmatprep.subr.mxu1 %v419_v0  ;;  %v146_v18 = vld [vmem:[#allocation7 + $0x8] sm:$0xff]  ;;  %v145_v19 = vld [vmem:[#allocation7] sm:$0xff]  ;;  %p395_p4 = por %p394_p3, %p393_p2 }
  0x2c   :  { %290 = vmatpush3.msra.mxu1 %v158_v6  ;;  %v255_v20 = vld [vmem:[%s472_s2] ss:$0 sm:$0xff] }
  0x2d   :  { %291 = vmatprep.subr.mxu1 %v419_v0  ;;  %v257_v25 = vld [vmem:[%s474_s4] ss:$0 sm:$0xff]  ;;  %p396_p5 = pnand %p395_p4, %p389_p1 }
  0x2e   :  { %292 = vmatpush3.msra.mxu1 %v157_v7 }
  0x2f   :  { %293 = vmatprep.subr.mxu1 %v419_v0 }
  0x30   :  { %294 = vmatpush3.msra.mxu1 %v156_v8 }
  0x31   :  { %295 = vmatprep.subr.mxu1 %v419_v0 }
  0x32   :  { %296 = vmatpush3.msra.mxu1 %v155_v9 }
  0x33   :  { %297 = vmatprep.subr.mxu1 %v419_v0 }
  0x34   :  { %298 = vmatpush3.msra.mxu1 %v154_v10 }
  0x35   :  { %299 = vmatprep.subr.mxu1 %v419_v0 }
  0x36   :  { %300 = vmatpush3.msra.mxu1 %v153_v11 }
  0x37   :  { %301 = vmatprep.subr.mxu1 %v419_v0 }
  0x38   :  { %302 = vmatpush3.msra.mxu1 %v152_v12 }
  0x39   :  { %303 = vmatprep.subr.mxu1 %v419_v0 }
  0x3a   :  { %304 = vmatpush3.msra.mxu1 %v151_v13 }
  0x3b   :  { %305 = vmatprep.subr.mxu1 %v419_v0 }
  0x3c   :  { %306 = vmatpush3.msra.mxu1 %v150_v14 }
  0x3d   :  { %307 = vmatprep.subr.mxu1 %v419_v0 }
  0x3e   :  { %308 = vmatpush3.msra.mxu1 %v149_v15 }
  0x3f   :  { %309 = vmatprep.subr.mxu1 %v419_v0 }
  0x40   :  { %310 = vmatpush3.msra.mxu1 %v148_v16 }
  0x41   :  { %311 = vmatprep.subr.mxu1 %v419_v0 }
  0x42   :  { %312 = vmatpush3.msra.mxu1 %v147_v17 }
  0x43   :  { %313 = vmatprep.subr.mxu1 %v419_v0 }
  0x44   :  { %314 = vmatpush3.msra.mxu1 %v146_v18 }
  0x45   :  { %315 = vmatprep.subr.mxu1 %v419_v0 }
  0x46   :  { %316 = vmatpush3.msra.mxu1 %v145_v19 }
  0xeb   :  { %v140_v21 = vpop.f32.mrf.mxu0 }
  0xec   :  { %v141_v22 = vadd.f32 %v255_v20, %v140_v21 }
  0xed   :  { %v284_v23 = vpop.f32.mrf.mxu0 }
  0xee   :  { %v144_v24 = vmax.f32 %v141_v22, 0.0 }
  0xf0   :  { %318 = vmatmul.mubr.f32.vlgmr.msra.gmra.mxu1 %v144_v24 }
 0x1b0   :  { %v234_v26 = vpop.f32.mrf.mxu1 }
 0x1b1   :  { %v235_v27 = vadd.f32 %v257_v25, %v234_v26 }
 0x1b2   :  { %v319_v28 = vpop.f32.mrf.mxu1 }
 0x1b3   :  { %238 = vst [vmem:[#allocation8] sm:$0xff] %v235_v27 }
 0x1b4   :  { %399 = shalt.err (!%p396_p5)
}
 0x1b5   :  { %248 = dma.vmem_to_hbm [thread:$0]  %s246_s12, 128, %s475_s5, [#allocation4]  }
 0x1b6   :  { %412 = dma.done.wait [#allocation4], 128  }
 0x1b7   :  { %413 = vsyncadd [#allocation4], 4294967168 }
 0x1b8   :  { %252 = vsyncpa [#allocation3], 1 }
 0x1b9   :  { %253 = vsyncpa [#allocation6], 1 }
 0x1ba   :  { %254 = vsyncpa [#allocation4], 1 }

// kernel: mlp_forward.1
= control target key start
LH: loop header
LB: loop body
LE: loop exit
PB: predicated region body
PF: predicated region fallthrough
CT: control target
= control target key end

     0   :  { %10 = vsyncpa [#allocation3], 0  ;;  %s470_s0 = inlined_call_operand.hbm [shape: f32[8,16], index: 0, kind: input, shape index: {}]   ;;  %s471_s1 = inlined_call_operand.hbm [shape: f32[16,128], index: 1, kind: input, shape index: {}]   ;;  %s472_s2 = inlined_call_operand.vmem [shape: f32[1,128], index: 2, kind: input, shape index: {}]   ;;  %s473_s3 = inlined_call_operand.hbm [shape: f32[128,128], index: 3, kind: input, shape index: {}]   ;;  %s474_s4 = inlined_call_operand.vmem [shape: f32[1,128], index: 4, kind: input, shape index: {}]   ;;  %s475_s5 = inlined_call_operand.hbm [shape: f32[8,128], index: 5, kind: output, shape index: {}]  }
   0x1   :  { %11 = vsyncpa [#allocation6], 0 }
   0x2   :  { %12 = vsyncpa [#allocation4], 0  ;;  %s414_s18 = smov [#allocation5]  }
   0x3   :  { %s28_s19 = sshll.u32 %s414_s18, 4  ;;  %s29_s19 = int_to_ptr.vmem [resolvable:$true] %s28_s19 }
   0x4   :  { %s336_s20 = scalar_lea.vmem %s29_s19, 256  ;;  %p341_p1 = scmp.lt.s32.totalorder %s29_s19, %s29_s19 }
   0x5   :  { %p337_p0 = scmp.ne.s32.totalorder %s29_s19, %s336_s20  ;;  %p342_p2 = scmp.lt.s32.totalorder %s336_s20, %s336_s20 }
   0x7   :  { %p343_p3 = por %p342_p2, %p341_p1 }
   0x9   :  { %p344_p4 = pnand %p343_p3, %p337_p0 }
   0xb   :  { %347 = shalt.err (!%p344_p4)
}
   0xc   :  { %s415_s21 = smov 128   ;;  %s416_s22 = smov 8  }
   0xd   :  { %34 = dma.hbm_to_vmem [thread:$0]  %s471_s1, 256, %s29_s19, [#allocation6], %s415_s21, %s415_s21, %s416_s22  }
   0xe   :  { %s417_s25 = smov [#allocation2]   ;;  %s418_s27 = smov [#allocation7]  }
   0xf   :  { %s19_s26 = sshll.u32 %s417_s25, 4  ;;  %s42_s28 = sshll.u32 %s418_s27, 4  ;;  %s20_s26 = int_to_ptr.vmem [resolvable:$true] %s19_s26  ;;  %s43_s28 = int_to_ptr.vmem [resolvable:$true] %s42_s28 }
  0x10   :  { %s356_s29 = scalar_lea.vmem %s20_s26, 128  ;;  %p361_p6 = scmp.lt.s32.totalorder %s20_s26, %s20_s26 }
  0x11   :  { %p357_p5 = scmp.ne.s32.totalorder %s20_s26, %s356_s29  ;;  %p362_p7 = scmp.lt.s32.totalorder %s356_s29, %s356_s29 }
  0x13   :  { %p363_p8 = por %p362_p7, %p361_p6 }
  0x15   :  { %p364_p9 = pnand %p363_p8, %p357_p5 }
  0x17   :  { %367 = shalt.err (!%p364_p9)
}
  0x18   :  { %22 = dma.hbm_to_vmem [thread:$0]  %s470_s0, 128, %s20_s26, [#allocation3]  }
  0x19   :  { %s376_s7 = scalar_lea.vmem %s43_s28, 2048  ;;  %p381_p11 = scmp.lt.s32.totalorder %s43_s28, %s43_s28 }
  0x1a   :  { %p377_p10 = scmp.ne.s32.totalorder %s43_s28, %s376_s7  ;;  %p382_p12 = scmp.lt.s32.totalorder %s376_s7, %s376_s7 }
  0x1c   :  { %p383_p13 = por %p382_p12, %p381_p11 }
  0x1e   :  { %p384_p0 = pnand %p383_p13, %p377_p10 }
  0x20   :  { %387 = shalt.err (!%p384_p0)
}
  0x21   :  { %48 = dma.hbm_to_vmem [thread:$0]  %s473_s3, 2048, %s43_s28, [#allocation6], %s415_s21, %s415_s21, %s416_s22  }
  0x22   :  { %408 = dma.done.wait [#allocation3], 128  }
  0x23   :  { %409 = vsyncadd [#allocation3], 4294967168 }
  0x24   :  { %410 = dma.done.wait [#allocation6], 2304  }
  0x25   :  { %411 = vsyncadd [#allocation6], 4294964992  ;;  %v419_v0 = vmov 0.0   ;;  %vm420_vm0 = vmmov 0   ;;  %v62_v1 = vld [vmem:[#allocation5 + $0x8] sm:$0xff]  ;;  %v61_v2 = vld [vmem:[#allocation5] sm:$0xff] }
  0x26   :  { %278 = vmatprep.subr.mxu0 %v419_v0  ;;  %282 = vmatprep.mubr.msk.f32.mxu0 %vm420_vm0, %v419_v0  ;;  %v60_v3 = vld [vmem:[#allocation2] sm:$0xff]  ;;  %vm70_vm1 = vcmask 130048   ;;  %v160_v4 = vld [vmem:[#allocation7 + $0x78] sm:$0xff]  ;;  %v159_v5 = vld [vmem:[#allocation7 + $0x70] sm:$0xff]  ;;  %s421_s11 = smov [#allocation8]  }
  0x27   :  { %285 = vmatprep.subr.mxu1 %v419_v0  ;;  %317 = vmatprep.mubr.msk.f32.mxu1 %vm420_vm0, %v419_v0  ;;  %v158_v6 = vld [vmem:[#allocation7 + $0x68] sm:$0xff]  ;;  %v157_v7 = vld [vmem:[#allocation7 + $0x60] sm:$0xff]  ;;  %v156_v8 = vld [vmem:[#allocation7 + $0x58] sm:$0xff]  ;;  %s245_s12 = sshll.u32 %s421_s11, 4  ;;  %s246_s12 = int_to_ptr.vmem [resolvable:$true] %s245_s12 }
  0x28   :  { %279 = vmatpush3.msra.mxu0 %v62_v1  ;;  %286 = vmatpush3.msra.mxu1 %v160_v4  ;;  %v155_v9 = vld [vmem:[#allocation7 + $0x50] sm:$0xff]  ;;  %v154_v10 = vld [vmem:[#allocation7 + $0x48] sm:$0xff]  ;;  %v153_v11 = vld [vmem:[#allocation7 + $0x40] sm:$0xff]  ;;  %s388_s13 = scalar_lea.vmem %s246_s12, 128  ;;  %p393_p2 = scmp.lt.s32.totalorder %s246_s12, %s246_s12 }
  0x29   :  { %280 = vmatprep.subr.mxu0 %v419_v0  ;;  %287 = vmatprep.subr.mxu1 %v419_v0  ;;  %v152_v12 = vld [vmem:[#allocation7 + $0x38] sm:$0xff]  ;;  %v151_v13 = vld [vmem:[#allocation7 + $0x30] sm:$0xff]  ;;  %v150_v14 = vld [vmem:[#allocation7 + $0x28] sm:$0xff]  ;;  %p389_p1 = scmp.ne.s32.totalorder %s246_s12, %s388_s13  ;;  %p394_p3 = scmp.lt.s32.totalorder %s388_s13, %s388_s13 }
  0x2a   :  { %281 = vmatpush3.msra.mxu0 %v61_v2  ;;  %288 = vmatpush3.msra.mxu1 %v159_v5  ;;  %v149_v15 = vld [vmem:[#allocation7 + $0x20] sm:$0xff]  ;;  %v148_v16 = vld [vmem:[#allocation7 + $0x18] sm:$0xff]  ;;  %v147_v17 = vld [vmem:[#allocation7 + $0x10] sm:$0xff] }
  0x2b   :  { %283 = vmatmul.mubr.msk.f32.vlgmr.msra.gmra.mxu0 %vm70_vm1, %v60_v3  ;;  %289 = vmatprep.subr.mxu1 %v419_v0  ;;  %v146_v18 = vld [vmem:[#allocation7 + $0x8] sm:$0xff]  ;;  %v145_v19 = vld [vmem:[#allocation7] sm:$0xff]  ;;  %p395_p4 = por %p394_p3, %p393_p2 }
  0x2c   :  { %290 = vmatpush3.msra.mxu1 %v158_v6  ;;  %v255_v20 = vld [vmem:[%s472_s2] ss:$0 sm:$0xff] }
  0x2d   :  { %291 = vmatprep.subr.mxu1 %v419_v0  ;;  %v257_v25 = vld [vmem:[%s474_s4] ss:$0 sm:$0xff]  ;;  %p396_p5 = pnand %p395_p4, %p389_p1 }
  0x2e   :  { %292 = vmatpush3.msra.mxu1 %v157_v7 }
  0x2f   :  { %293 = vmatprep.subr.mxu1 %v419_v0 }
  0x30   :  { %294 = vmatpush3.msra.mxu1 %v156_v8 }
  0x31   :  { %295 = vmatprep.subr.mxu1 %v419_v0 }
  0x32   :  { %296 = vmatpush3.msra.mxu1 %v155_v9 }
  0x33   :  { %297 = vmatprep.subr.mxu1 %v419_v0 }
  0x34   :  { %298 = vmatpush3.msra.mxu1 %v154_v10 }
  0x35   :  { %299 = vmatprep.subr.mxu1 %v419_v0 }
  0x36   :  { %300 = vmatpush3.msra.mxu1 %v153_v11 }
  0x37   :  { %301 = vmatprep.subr.mxu1 %v419_v0 }
  0x38   :  { %302 = vmatpush3.msra.mxu1 %v152_v12 }
  0x39   :  { %303 = vmatprep.subr.mxu1 %v419_v0 }
  0x3a   :  { %304 = vmatpush3.msra.mxu1 %v151_v13 }
  0x3b   :  { %305 = vmatprep.subr.mxu1 %v419_v0 }
  0x3c   :  { %306 = vmatpush3.msra.mxu1 %v150_v14 }
  0x3d   :  { %307 = vmatprep.subr.mxu1 %v419_v0 }
  0x3e   :  { %308 = vmatpush3.msra.mxu1 %v149_v15 }
  0x3f   :  { %309 = vmatprep.subr.mxu1 %v419_v0 }
  0x40   :  { %310 = vmatpush3.msra.mxu1 %v148_v16 }
  0x41   :  { %311 = vmatprep.subr.mxu1 %v419_v0 }
  0x42   :  { %312 = vmatpush3.msra.mxu1 %v147_v17 }
  0x43   :  { %313 = vmatprep.subr.mxu1 %v419_v0 }
  0x44   :  { %314 = vmatpush3.msra.mxu1 %v146_v18 }
  0x45   :  { %315 = vmatprep.subr.mxu1 %v419_v0 }
  0x46   :  { %316 = vmatpush3.msra.mxu1 %v145_v19 }
  0xeb   :  { %v140_v21 = vpop.f32.mrf.mxu0 }
  0xec   :  { %v141_v22 = vadd.f32 %v255_v20, %v140_v21 }
  0xed   :  { %v284_v23 = vpop.f32.mrf.mxu0 }
  0xee   :  { %v144_v24 = vmax.f32 %v141_v22, 0.0 }
  0xf0   :  { %318 = vmatmul.mubr.f32.vlgmr.msra.gmra.mxu1 %v144_v24 }
 0x1b0   :  { %v234_v26 = vpop.f32.mrf.mxu1 }
 0x1b1   :  { %v235_v27 = vadd.f32 %v257_v25, %v234_v26 }
 0x1b2   :  { %v319_v28 = vpop.f32.mrf.mxu1 }
 0x1b3   :  { %238 = vst [vmem:[#allocation8] sm:$0xff] %v235_v27 }
 0x1b4   :  { %399 = shalt.err (!%p396_p5)
}
 0x1b5   :  { %248 = dma.vmem_to_hbm [thread:$0]  %s246_s12, 128, %s475_s5, [#allocation4]  }
 0x1b6   :  { %412 = dma.done.wait [#allocation4], 128  }
 0x1b7   :  { %413 = vsyncadd [#allocation4], 4294967168 }
 0x1b8   :  { %252 = vsyncpa [#allocation3], 1 }
 0x1b9   :  { %253 = vsyncpa [#allocation6], 1 }
 0x1ba   :  { %254 = vsyncpa [#allocation4], 1 }

</bundles_post_ra>
